<compile_context>
chip_gen: v7x
topology: tpu7x:2x2x1
jax: 0.10.0
libtpu: 0.0.40
codegen_flags: <defaults>
</compile_context>

<pallas_src>
import functools

import jax
import jax.numpy as jnp
from jax.experimental import pallas as pl
from jax.experimental.pallas import tpu as pltpu

NEG_SLOPE = 0.01          # F.leaky_relu default negative_slope
LANE = 128                # lane width — pad feature dims to this
ALIGN_B = 16              # batch-tile alignment (bf16 packs 2 rows / sublane)


def _round_up(x, m):
    return ((x + m - 1) // m) * m


def _cdiv(a, b):
    return -(-a // b)


def _detect_vmem_bytes():
    try:
        return int(pltpu.get_tpu_info().vmem_capacity_bytes)
    except Exception:
        return 64 * 1024 * 1024   # conservative: assume v7x-sized VMEM


_VMEM_PHYS = _detect_vmem_bytes()
_BIG_VMEM = _VMEM_PHYS >= 96 * 1024 * 1024      # v5e / v6e (128 MiB) vs v7x (64 MiB)
TILE_B_MAX = 2048 if _BIG_VMEM else 512          # rows per grid step
VMEM_CAP = (100 << 20) if _BIG_VMEM else (48 << 20)


def _leaky_relu_f32(x):
    return jnp.where(x >= 0, x, NEG_SLOPE * x)


def _pad2(a, rows, cols):
    return jnp.pad(a, ((0, rows - a.shape[0]), (0, cols - a.shape[1])))


def _choose_batch_tiling(B):
    """Pick (tile_b, B_pad): 16-aligned rows, >=2 grid steps when it pays off,
    and minimal padding for B just above TILE_B_MAX (cdiv-style split)."""
    n_steps = max(1, _cdiv(B, TILE_B_MAX))
    if B >= 2 * ALIGN_B:
        n_steps = max(n_steps, 2)                 # shard across v7x's 2 TCs
    tile_b = _round_up(_cdiv(B, n_steps), ALIGN_B)
    tile_b = min(tile_b, _round_up(B, ALIGN_B))
    B_pad = _round_up(B, tile_b)
    return tile_b, B_pad


# --------------------------------------------------------------------------- #
# Kernel
# --------------------------------------------------------------------------- #
def nett_kernel(x_ref, w1_ref, b1_ref, w2_ref, b2_ref, w3_ref, b3_ref, o_ref):
    # x streamed as f32; cast to bf16 in-register right before the MXU.
    x = x_ref[...].astype(jnp.bfloat16)

    h = jnp.dot(x, w1_ref[...], preferred_element_type=jnp.float32)
    h = _leaky_relu_f32(h + b1_ref[...])

    h = jnp.dot(h.astype(jnp.bfloat16), w2_ref[...],
                preferred_element_type=jnp.float32)
    h = _leaky_relu_f32(h + b2_ref[...])

    y = jnp.dot(h.astype(jnp.bfloat16), w3_ref[...],
                preferred_element_type=jnp.float32)
    o_ref[...] = (y + b3_ref[...]).astype(o_ref.dtype)


# --------------------------------------------------------------------------- #
# Forward
# --------------------------------------------------------------------------- #
@functools.partial(jax.jit, static_argnames=("hidden",))
def _nett_forward_padded(x, w1, b1, w2, b2, w3, b3, *, hidden):
    """x: (B, F) f32.  w*/b*: pre-padded (see prepare_nett_params)."""
    B, F = x.shape
    F_pad, H_pad = w1.shape                     # padded dims come from the weights

    tile_b, B_pad = _choose_batch_tiling(B)
    grid = (B_pad // tile_b,)

    # Only the reduction (F) zero-pad + batch pad; exact under f32 accumulation
    # since leaky_relu(0) == 0.  No-op when shapes are already aligned.
    x_p = x
    if (B_pad, F_pad) != (B, F):
        x_p = jnp.pad(x, ((0, B_pad - B), (0, F_pad - F)))

    # VMEM budget: double-buffer factor applied once; capped per chip generation.
    weight_bytes = (F_pad * H_pad + H_pad * H_pad + H_pad * F_pad) * 2   # bf16
    bias_bytes = (2 * H_pad + F_pad) * 4                                 # f32
    io_bytes = tile_b * F_pad * (4 + 4)                                  # f32 x + f32 out tile
    act_bytes = tile_b * H_pad * (4 + 2) + tile_b * F_pad * (4 + 2)      # intermediates
    needed = 2 * (weight_bytes + bias_bytes + io_bytes) + act_bytes
    vmem_limit = int(min(max(int(needed * 1.25) + (4 << 20), 32 << 20), VMEM_CAP))

    # Scheduling hint from the REAL (unpadded) problem size.
    H = hidden
    flops = 2 * B * (F * H + H * H + H * F)
    bytes_accessed = (B * F * 4                         # x in (f32)
                      + (F * H + H * H + H * F) * 2     # weights (bf16)
                      + (2 * H + F) * 4                 # biases (f32)
                      + B * F * 4)                      # out (f32)

    batch_spec = pl.BlockSpec((tile_b, F_pad), lambda i: (i, 0))
    const2 = lambda i: (0, 0)   # grid-invariant: weights/biases DMA'd once, stay resident

    out_pad = pl.pallas_call(
        nett_kernel,
        out_shape=jax.ShapeDtypeStruct((B_pad, F_pad), jnp.float32),
        grid=grid,
        in_specs=[
            batch_spec,                                   # x
            pl.BlockSpec((F_pad, H_pad), const2),         # w1
            pl.BlockSpec((1, H_pad), const2),             # b1
            pl.BlockSpec((H_pad, H_pad), const2),         # w2
            pl.BlockSpec((1, H_pad), const2),             # b2
            pl.BlockSpec((H_pad, F_pad), const2),         # w3
            pl.BlockSpec((1, F_pad), const2),             # b3
        ],
        out_specs=batch_spec,
        compiler_params=pltpu.CompilerParams(
            dimension_semantics=("parallel",),
            vmem_limit_bytes=vmem_limit,
        ),
        cost_estimate=pl.CostEstimate(
            flops=flops, transcendentals=0, bytes_accessed=bytes_accessed),
    )(x_p, w1, b1, w2, b2, w3, b3)

    return out_pad[:B, :F]


def nett_forward(x, prepared):
    return _nett_forward_padded(
        x,
        prepared["w1"], prepared["b1"],
        prepared["w2"], prepared["b2"],
        prepared["w3"], prepared["b3"],
        hidden=prepared["hidden"],
    )


# --------------------------------------------------------------------------- #
# Params
# --------------------------------------------------------------------------- #
def init_nett_params(key, num_features, length_hidden):
    """Deterministic init matching nn.Linear's default (uniform +-1/sqrt(fan_in)).
    Weights stored as (in, out) = PyTorch weight transposed."""
    hidden = int(length_hidden * num_features)

    def linear(k, fan_in, fan_out):
        kw, kb = jax.random.split(k)
        bound = 1.0 / jnp.sqrt(fan_in)
        w = jax.random.uniform(kw, (fan_in, fan_out), jnp.float32, -bound, bound)
        b = jax.random.uniform(kb, (1, fan_out), jnp.float32, -bound, bound)
        return w, b

    k1, k2, k3 = jax.random.split(key, 3)
    w1, b1 = linear(k1, num_features, hidden)
    w2, b2 = linear(k2, hidden, hidden)
    w3, b3 = linear(k3, hidden, num_features)
    return {"w1": w1, "b1": b1, "w2": w2, "b2": b2, "w3": w3, "b3": b3}


def prepare_nett_params(params):
    """One-time lane-pad + bf16 cast of the weights (f32 biases).
    Keeps the per-forward HBM traffic down to x/out only."""
    w1, b1 = params["w1"], params["b1"]
    w2, b2 = params["w2"], params["b2"]
    w3, b3 = params["w3"], params["b3"]
    F, H = w1.shape
    F_pad = _round_up(max(F, LANE), LANE)
    H_pad = _round_up(max(H, LANE), LANE)
    prepared = {
        "w1": _pad2(w1, F_pad, H_pad).astype(jnp.bfloat16),
        "b1": _pad2(b1, 1, H_pad).astype(jnp.float32),
        "w2": _pad2(w2, H_pad, H_pad).astype(jnp.bfloat16),
        "b2": _pad2(b2, 1, H_pad).astype(jnp.float32),
        "w3": _pad2(w3, H_pad, F_pad).astype(jnp.bfloat16),
        "b3": _pad2(b3, 1, F_pad).astype(jnp.float32),
        "hidden": H,            # real hidden dim (static) for the cost estimate
    }
    jax.block_until_ready([v for v in prepared.values() if not isinstance(v, int)])
    return prepared


# --------------------------------------------------------------------------- #
# References
# --------------------------------------------------------------------------- #
def nett_reference_f32(x, params):
    """Pure-f32 JAX reference of the PyTorch forward pass."""
    h = x @ params["w1"] + params["b1"]
    h = jnp.where(h >= 0, h, NEG_SLOPE * h)
    h = h @ params["w2"] + params["b2"]
    h = jnp.where(h >= 0, h, NEG_SLOPE * h)
    return h @ params["w3"] + params["b3"]


def nett_reference_bf16(x, params):
    """Reference emulating the kernel's numerics: bf16 matmul operands, f32 accumulate."""
    bf = jnp.bfloat16
    h = jnp.dot(x.astype(bf), params["w1"].astype(bf),
                preferred_element_type=jnp.float32) + params["b1"]
    h = jnp.where(h >= 0, h, NEG_SLOPE * h)
    h = jnp.dot(h.astype(bf), params["w2"].astype(bf),
                preferred_element_type=jnp.float32) + params["b2"]
    h = jnp.where(h >= 0, h, NEG_SLOPE * h)
    return jnp.dot(h.astype(bf), params["w3"].astype(bf),
                   preferred_element_type=jnp.float32) + params["b3"]


if __name__ == "__main__":
    num_features = 16
    length_hidden = 2   # hidden dim = 32
    batch = 8

    key = jax.random.PRNGKey(0)
    k_params, k_x = jax.random.split(key)

    params = init_nett_params(k_params, num_features, length_hidden)
    prepared = prepare_nett_params(params)          # pad/cast weights ONCE
    x = jax.random.normal(k_x, (batch, num_features), jnp.float32)

    out = jax.block_until_ready(nett_forward(x, prepared))
    assert out.shape == (batch, num_features), out.shape

    # Tight check vs. a reference with identical (bf16-operand, f32-accum) numerics.
    ref_bf16 = nett_reference_bf16(x, params)
    assert jnp.allclose(out, ref_bf16, atol=1e-3, rtol=1e-3), "mismatch vs bf16 reference"

    # Loose check vs. the pure-f32 PyTorch-equivalent reference (bf16 rounding tolerance).
    ref_f32 = nett_reference_f32(x, params)
    assert jnp.allclose(out, ref_f32, atol=5e-2, rtol=5e-2), "mismatch vs f32 reference"

    print("KERNEL_OK")
</pallas_src>

<mosaic_0001>
module attributes {stable_mosaic.version = 11 : i64} {
  func.func @nett_kernel(%arg0: i32, %arg1: memref<16x128xf32, #tpu.memory_space<vmem>>, %arg2: memref<128x128xbf16, #tpu.memory_space<vmem>>, %arg3: memref<1x128xf32, #tpu.memory_space<vmem>>, %arg4: memref<128x128xbf16, #tpu.memory_space<vmem>>, %arg5: memref<1x128xf32, #tpu.memory_space<vmem>>, %arg6: memref<128x128xbf16, #tpu.memory_space<vmem>>, %arg7: memref<1x128xf32, #tpu.memory_space<vmem>>, %arg8: memref<16x128xf32, #tpu.memory_space<vmem>>) attributes {dimension_semantics = [#tpu.dimension_semantics<parallel>], iteration_bounds = array<i64: 1>, scalar_prefetch = 0 : i64, scratch_operands = 0 : i64, tpu.core_type = #tpu.core_type<tc>, window_params = [{transform_indices = @transform_0, window_bounds = array<i64: 16, 128>}, {pipeline_mode = #tpu.pipeline_mode<synchronous>, transform_indices = @transform_1, window_bounds = array<i64: 128, 128>}, {pipeline_mode = #tpu.pipeline_mode<synchronous>, transform_indices = @transform_2, window_bounds = array<i64: 1, 128>}, {pipeline_mode = #tpu.pipeline_mode<synchronous>, transform_indices = @transform_3, window_bounds = array<i64: 128, 128>}, {pipeline_mode = #tpu.pipeline_mode<synchronous>, transform_indices = @transform_4, window_bounds = array<i64: 1, 128>}, {pipeline_mode = #tpu.pipeline_mode<synchronous>, transform_indices = @transform_5, window_bounds = array<i64: 128, 128>}, {pipeline_mode = #tpu.pipeline_mode<synchronous>, transform_indices = @transform_6, window_bounds = array<i64: 1, 128>}, {transform_indices = @transform_7, window_bounds = array<i64: 16, 128>}]} {
    %c0 = arith.constant 0 : index
    %c0_0 = arith.constant 0 : index
    %0 = vector.load %arg1[%c0, %c0_0] : memref<16x128xf32, #tpu.memory_space<vmem>>, vector<16x128xf32>
    %1 = arith.truncf %0 : vector<16x128xf32> to vector<16x128xbf16>
    %c0_1 = arith.constant 0 : index
    %c0_2 = arith.constant 0 : index
    %2 = vector.load %arg2[%c0_1, %c0_2] : memref<128x128xbf16, #tpu.memory_space<vmem>>, vector<128x128xbf16>
    %cst = arith.constant dense<0.000000e+00> : vector<16x128xf32>
    %3 = tpu.matmul %1, %2, %cst {dimension_numbers = #tpu.dot_dimension_numbers<[1], [0], [0], [1], [0, 0, 1, 1], [], []>} : vector<16x128xbf16>, vector<128x128xbf16>, vector<16x128xf32> -> vector<16x128xf32>
    %c0_3 = arith.constant 0 : index
    %c0_4 = arith.constant 0 : index
    %4 = vector.load %arg3[%c0_3, %c0_4] : memref<1x128xf32, #tpu.memory_space<vmem>>, vector<1x128xf32>
    %5 = vector.broadcast %4 : vector<1x128xf32> to vector<16x128xf32>
    %6 = arith.addf %3, %5 : vector<16x128xf32>
    %cst_5 = arith.constant 0.000000e+00 : f32
    %7 = vector.broadcast %cst_5 : f32 to vector<16x128xf32>
    %8 = arith.cmpf oge, %6, %7 : vector<16x128xf32>
    %cst_6 = arith.constant 0.00999999977 : f32
    %9 = vector.broadcast %cst_6 : f32 to vector<16x128xf32>
    %10 = arith.mulf %9, %6 : vector<16x128xf32>
    %11 = arith.select %8, %6, %10 : vector<16x128xi1>, vector<16x128xf32>
    %12 = arith.truncf %11 : vector<16x128xf32> to vector<16x128xbf16>
    %c0_7 = arith.constant 0 : index
    %c0_8 = arith.constant 0 : index
    %13 = vector.load %arg4[%c0_7, %c0_8] : memref<128x128xbf16, #tpu.memory_space<vmem>>, vector<128x128xbf16>
    %cst_9 = arith.constant dense<0.000000e+00> : vector<16x128xf32>
    %14 = tpu.matmul %12, %13, %cst_9 {dimension_numbers = #tpu.dot_dimension_numbers<[1], [0], [0], [1], [0, 0, 1, 1], [], []>} : vector<16x128xbf16>, vector<128x128xbf16>, vector<16x128xf32> -> vector<16x128xf32>
    %c0_10 = arith.constant 0 : index
    %c0_11 = arith.constant 0 : index
    %15 = vector.load %arg5[%c0_10, %c0_11] : memref<1x128xf32, #tpu.memory_space<vmem>>, vector<1x128xf32>
    %16 = vector.broadcast %15 : vector<1x128xf32> to vector<16x128xf32>
    %17 = arith.addf %14, %16 : vector<16x128xf32>
    %cst_12 = arith.constant 0.000000e+00 : f32
    %18 = vector.broadcast %cst_12 : f32 to vector<16x128xf32>
    %19 = arith.cmpf oge, %17, %18 : vector<16x128xf32>
    %cst_13 = arith.constant 0.00999999977 : f32
    %20 = vector.broadcast %cst_13 : f32 to vector<16x128xf32>
    %21 = arith.mulf %20, %17 : vector<16x128xf32>
    %22 = arith.select %19, %17, %21 : vector<16x128xi1>, vector<16x128xf32>
    %23 = arith.truncf %22 : vector<16x128xf32> to vector<16x128xbf16>
    %c0_14 = arith.constant 0 : index
    %c0_15 = arith.constant 0 : index
    %24 = vector.load %arg6[%c0_14, %c0_15] : memref<128x128xbf16, #tpu.memory_space<vmem>>, vector<128x128xbf16>
    %cst_16 = arith.constant dense<0.000000e+00> : vector<16x128xf32>
    %25 = tpu.matmul %23, %24, %cst_16 {dimension_numbers = #tpu.dot_dimension_numbers<[1], [0], [0], [1], [0, 0, 1, 1], [], []>} : vector<16x128xbf16>, vector<128x128xbf16>, vector<16x128xf32> -> vector<16x128xf32>
    %c0_17 = arith.constant 0 : index
    %c0_18 = arith.constant 0 : index
    %26 = vector.load %arg7[%c0_17, %c0_18] : memref<1x128xf32, #tpu.memory_space<vmem>>, vector<1x128xf32>
    %27 = vector.broadcast %26 : vector<1x128xf32> to vector<16x128xf32>
    %28 = arith.addf %25, %27 : vector<16x128xf32>
    %c0_19 = arith.constant 0 : index
    %c0_20 = arith.constant 0 : index
    %29 = vector.load %arg8[%c0_19, %c0_20] : memref<16x128xf32, #tpu.memory_space<vmem>>, vector<16x128xf32>
    tpu.vector_store %arg8[%c0_19, %c0_20], %28 {strides = array<i32>} : memref<16x128xf32, #tpu.memory_space<vmem>>, vector<16x128xf32>,
    return
  }
  func.func @transform_0(%arg0: i32) -> (i32, i32) {
    %c0_i32 = arith.constant 0 : i32
    %c0_i32_0 = arith.constant 0 : i32
    return %arg0, %c0_i32 : i32, i32
  }
  func.func @transform_1(%arg0: i32) -> (i32, i32) {
    %c0_i32 = arith.constant 0 : i32
    %c0_i32_0 = arith.constant 0 : i32
    %c0_i32_1 = arith.constant 0 : i32
    return %c0_i32, %c0_i32_0 : i32, i32
  }
  func.func @transform_2(%arg0: i32) -> (i32, i32) {
    %c0_i32 = arith.constant 0 : i32
    %c0_i32_0 = arith.constant 0 : i32
    %c0_i32_1 = arith.constant 0 : i32
    return %c0_i32, %c0_i32_0 : i32, i32
  }
  func.func @transform_3(%arg0: i32) -> (i32, i32) {
    %c0_i32 = arith.constant 0 : i32
    %c0_i32_0 = arith.constant 0 : i32
    %c0_i32_1 = arith.constant 0 : i32
    return %c0_i32, %c0_i32_0 : i32, i32
  }
  func.func @transform_4(%arg0: i32) -> (i32, i32) {
    %c0_i32 = arith.constant 0 : i32
    %c0_i32_0 = arith.constant 0 : i32
    %c0_i32_1 = arith.constant 0 : i32
    return %c0_i32, %c0_i32_0 : i32, i32
  }
  func.func @transform_5(%arg0: i32) -> (i32, i32) {
    %c0_i32 = arith.constant 0 : i32
    %c0_i32_0 = arith.constant 0 : i32
    %c0_i32_1 = arith.constant 0 : i32
    return %c0_i32, %c0_i32_0 : i32, i32
  }
  func.func @transform_6(%arg0: i32) -> (i32, i32) {
    %c0_i32 = arith.constant 0 : i32
    %c0_i32_0 = arith.constant 0 : i32
    %c0_i32_1 = arith.constant 0 : i32
    return %c0_i32, %c0_i32_0 : i32, i32
  }
  func.func @transform_7(%arg0: i32) -> (i32, i32) {
    %c0_i32 = arith.constant 0 : i32
    %c0_i32_0 = arith.constant 0 : i32
    return %arg0, %c0_i32 : i32, i32
  }
}

</mosaic_0001>

<bundles_post_ra>
// kernel: _nett_forward_padded.1
= control target key start
LH: loop header
LB: loop body
LE: loop exit
PB: predicated region body
PF: predicated region fallthrough
CT: control target
= control target key end

     0   :  { %12 = vsyncpa [#allocation3], 0  ;;  %s794_s0 = inlined_call_operand.vmem [shape: f32[16,128], index: 0, kind: input, shape index: {}]   ;;  %s795_s1 = inlined_call_operand.hbm [shape: bf16[128,128], index: 1, kind: input, shape index: {}]   ;;  %s796_s2 = inlined_call_operand.vmem [shape: f32[1,128], index: 2, kind: input, shape index: {}]   ;;  %s797_s3 = inlined_call_operand.hbm [shape: bf16[128,128], index: 3, kind: input, shape index: {}]   ;;  %s798_s4 = inlined_call_operand.vmem [shape: f32[1,128], index: 4, kind: input, shape index: {}]   ;;  %s799_s5 = inlined_call_operand.hbm [shape: bf16[128,128], index: 5, kind: input, shape index: {}]   ;;  %s800_s6 = inlined_call_operand.vmem [shape: f32[1,128], index: 6, kind: input, shape index: {}]   ;;  %s801_s7 = inlined_call_operand.vmem [shape: f32[16,128], index: 7, kind: output, shape index: {}]  }
   0x1   :  { %13 = vsyncpa [#allocation5], 0  ;;  %s644_s24 = smov [#allocation4]   ;;  %s645_s26 = smov [#allocation2]  }
   0x2   :  { %s35_s25 = sshll.u32 %s644_s24, 4  ;;  %s21_s27 = sshll.u32 %s645_s26, 4  ;;  %s36_s25 = int_to_ptr.vmem [resolvable:$true] %s35_s25  ;;  %s691_s27 = int_to_ptr.vmem [resolvable:$true] %s21_s27 }
   0x3   :  { %s574_s30 = scalar_lea.hbm %s797_s3, 1024 }
   0x4   :  { %p575_p0 = scmp.ne.s32.totalorder %s797_s3, %s574_s30  ;;  %p578_p1 = scmp.lt.u32.totalorder %s574_s30, %s797_s3 }
   0x6   :  { %p580_p2 = pnand %p578_p1, %p575_p0 }
   0x8   :  { %583 = shalt.err (!%p580_p2)
}
   0x9   :  { %s584_s12 = scalar_lea.vmem %s36_s25, 1024  ;;  %p589_p4 = scmp.lt.s32.totalorder %s36_s25, %s36_s25 }
   0xa   :  { %p585_p3 = scmp.ne.s32.totalorder %s36_s25, %s584_s12  ;;  %p590_p5 = scmp.lt.s32.totalorder %s584_s12, %s584_s12 }
   0xc   :  { %p591_p6 = por %p590_p5, %p589_p4 }
   0xe   :  { %p592_p7 = pnand %p591_p6, %p585_p3 }
  0x10   :  { %595 = shalt.err (!%p592_p7)
}
  0x11   :  { %s646_s13 = smov 64   ;;  %s647_s14 = smov 4  }
  0x12   :  { %41 = dma.hbm_to_vmem [thread:$0]  %s797_s3, 1024, %s36_s25, [#allocation5], %s646_s13, %s646_s13, %s647_s14  }
  0x13   :  { %s596_s19 = scalar_lea.hbm %s795_s1, 1024 }
  0x14   :  { %p597_p8 = scmp.ne.s32.totalorder %s795_s1, %s596_s19  ;;  %p600_p9 = scmp.lt.u32.totalorder %s596_s19, %s795_s1 }
  0x16   :  { %p602_p10 = pnand %p600_p9, %p597_p8 }
  0x18   :  { %605 = shalt.err (!%p602_p10)
}
  0x19   :  { %s606_s24 = scalar_lea.vmem %s691_s27, 1024  ;;  %p611_p12 = scmp.lt.s32.totalorder %s691_s27, %s691_s27 }
  0x1a   :  { %p607_p11 = scmp.ne.s32.totalorder %s691_s27, %s606_s24  ;;  %p612_p13 = scmp.lt.s32.totalorder %s606_s24, %s606_s24 }
  0x1c   :  { %p613_p0 = por %p612_p13, %p611_p12 }
  0x1e   :  { %p614_p1 = pnand %p613_p0, %p607_p11 }
  0x20   :  { %617 = shalt.err (!%p614_p1)
}
  0x21   :  { %27 = dma.hbm_to_vmem [thread:$0]  %s795_s1, 1024, %s691_s27, [#allocation3], %s646_s13, %s646_s13, %s647_s14  }
  0x22   :  { %s648_s26 = smov [#allocation6]   ;;  %s618_s8 = scalar_lea.hbm %s799_s5, 1024 }
  0x23   :  { %s49_s28 = sshll.u32 %s648_s26, 4  ;;  %p619_p2 = scmp.ne.s32.totalorder %s799_s5, %s618_s8  ;;  %s50_s28 = int_to_ptr.vmem [resolvable:$true] %s49_s28 }
  0x24   :  { %p622_p3 = scmp.lt.u32.totalorder %s618_s8, %s799_s5 }
  0x26   :  { %p624_p4 = pnand %p622_p3, %p619_p2 }
  0x28   :  { %627 = shalt.err (!%p624_p4)
}
  0x29   :  { %s628_s15 = scalar_lea.vmem %s50_s28, 1024  ;;  %p633_p6 = scmp.lt.s32.totalorder %s50_s28, %s50_s28 }
  0x2a   :  { %p629_p5 = scmp.ne.s32.totalorder %s50_s28, %s628_s15  ;;  %p634_p7 = scmp.lt.s32.totalorder %s628_s15, %s628_s15 }
  0x2c   :  { %p635_p8 = por %p634_p7, %p633_p6 }
  0x2e   :  { %p636_p9 = pnand %p635_p8, %p629_p5 }
  0x30   :  { %639 = shalt.err (!%p636_p9)
}
  0x31   :  { %55 = dma.hbm_to_vmem [thread:$0]  %s799_s5, 1024, %s50_s28, [#allocation5], %s646_s13, %s646_s13, %s647_s14  }
  0x32   :  { %640 = dma.done.wait [#allocation3], 1024  }
  0x33   :  { %641 = vsyncadd [#allocation3], 4294966272 }
  0x34   :  { %642 = dma.done.wait [#allocation5], 2048  }
  0x35   :  { %643 = vsyncadd [#allocation5], 4294965248  ;;  %v649_v0 = vmov 0.0   ;;  %vm650_vm0 = vmmov 0   ;;  %v550_v1 = vld [vmem:[#allocation2] sm:$0xff]   ;;  %v551_v2 = vld [vmem:[#allocation2 + $0x8] sm:$0xff]  }
  0x36   :  { %483 = vmatprep.subr.bf16.mxu0 %v649_v0  ;;  %499 = vmatprep.mubr.msk.bf16.mxu0 %vm650_vm0, %v649_v0  ;;  %v552_v3 = vld [vmem:[#allocation2 + $0x10] sm:$0xff]   ;;  %v558_v4 = vld [vmem:[#allocation4] sm:$0xff]   ;;  %v553_v5 = vld [vmem:[#allocation2 + $0x18] sm:$0xff]  }
  0x37   :  { %503 = vmatprep.subr.bf16.mxu1 %v649_v0  ;;  %519 = vmatprep.mubr.msk.bf16.mxu1 %vm650_vm0, %v649_v0  ;;  %v559_v6 = vld [vmem:[#allocation4 + $0x8] sm:$0xff]   ;;  %v554_v7 = vld [vmem:[#allocation2 + $0x20] sm:$0xff]   ;;  %v560_v8 = vld [vmem:[#allocation4 + $0x10] sm:$0xff]  }
  0x38   :  { %484 = vmatpush3.bf16.msra.mxu0 %v550_v1  ;;  %504 = vmatpush3.bf16.msra.mxu1 %v558_v4  ;;  %v555_v9 = vld [vmem:[#allocation2 + $0x28] sm:$0xff]   ;;  %v561_v10 = vld [vmem:[#allocation4 + $0x18] sm:$0xff]   ;;  %v556_v11 = vld [vmem:[#allocation2 + $0x30] sm:$0xff]  }
  0x39   :  { %485 = vmatprep.subr.bf16.mxu0 %v649_v0  ;;  %505 = vmatprep.subr.bf16.mxu1 %v649_v0  ;;  %v562_v12 = vld [vmem:[#allocation4 + $0x20] sm:$0xff]   ;;  %v557_v13 = vld [vmem:[#allocation2 + $0x38] sm:$0xff]   ;;  %v69_v15 = vld [vmem:[%s794_s0 + $0x8] sm:$0xff] }
  0x3a   :  { %v68_v14 = vld [vmem:[%s794_s0] sm:$0xff]  ;;  %v563_v16 = vld [vmem:[#allocation4 + $0x28] sm:$0xff]   ;;  %v564_v18 = vld [vmem:[#allocation4 + $0x30] sm:$0xff]  }
  0x3b   :  { %v70_v17 = vpack.c.bf16 %v69_v15, %v68_v14  ;;  %v565_v19 = vld [vmem:[#allocation4 + $0x38] sm:$0xff]   ;;  %v566_v20 = vld [vmem:[#allocation6] sm:$0xff]   ;;  %v567_v21 = vld [vmem:[#allocation6 + $0x8] sm:$0xff]  }
  0x3c   :  { %486 = vmatpush3.bf16.msra.mxu0 %v551_v2  ;;  %506 = vmatpush3.bf16.msra.mxu1 %v559_v6  ;;  %v568_v22 = vld [vmem:[#allocation6 + $0x10] sm:$0xff]   ;;  %v569_v23 = vld [vmem:[#allocation6 + $0x18] sm:$0xff]   ;;  %v570_v24 = vld [vmem:[#allocation6 + $0x20] sm:$0xff]  }
  0x3d   :  { %487 = vmatprep.subr.bf16.mxu0 %v649_v0  ;;  %507 = vmatprep.subr.bf16.mxu1 %v649_v0  ;;  %v571_v25 = vld [vmem:[#allocation6 + $0x28] sm:$0xff]   ;;  %v429_v26 = vld [vmem:[%s796_s2] ss:$0 sm:$0xff]  ;;  %v572_v38 = vld [vmem:[#allocation6 + $0x30] sm:$0xff]  }
  0x3e   :  { %v573_v39 = vld [vmem:[#allocation6 + $0x38] sm:$0xff]   ;;  %v438_v40 = vld [vmem:[%s798_s4] ss:$0 sm:$0xff] }
  0x3f   :  { %v447_v52 = vld [vmem:[%s800_s6] ss:$0 sm:$0xff] }
  0x40   :  { %488 = vmatpush3.bf16.msra.mxu0 %v552_v3  ;;  %508 = vmatpush3.bf16.msra.mxu1 %v560_v8 }
  0x41   :  { %489 = vmatprep.subr.bf16.mxu0 %v649_v0  ;;  %509 = vmatprep.subr.bf16.mxu1 %v649_v0 }
  0x44   :  { %490 = vmatpush3.bf16.msra.mxu0 %v553_v5  ;;  %510 = vmatpush3.bf16.msra.mxu1 %v561_v10 }
  0x45   :  { %491 = vmatprep.subr.bf16.mxu0 %v649_v0  ;;  %511 = vmatprep.subr.bf16.mxu1 %v649_v0 }
  0x48   :  { %492 = vmatpush3.bf16.msra.mxu0 %v554_v7  ;;  %512 = vmatpush3.bf16.msra.mxu1 %v562_v12 }
  0x49   :  { %493 = vmatprep.subr.bf16.mxu0 %v649_v0  ;;  %513 = vmatprep.subr.bf16.mxu1 %v649_v0 }
  0x4c   :  { %494 = vmatpush3.bf16.msra.mxu0 %v555_v9  ;;  %514 = vmatpush3.bf16.msra.mxu1 %v563_v16 }
  0x4d   :  { %495 = vmatprep.subr.bf16.mxu0 %v649_v0  ;;  %515 = vmatprep.subr.bf16.mxu1 %v649_v0 }
  0x50   :  { %496 = vmatpush3.bf16.msra.mxu0 %v556_v11  ;;  %516 = vmatpush3.bf16.msra.mxu1 %v564_v18 }
  0x51   :  { %497 = vmatprep.subr.bf16.mxu0 %v649_v0  ;;  %517 = vmatprep.subr.bf16.mxu1 %v649_v0 }
  0x54   :  { %498 = vmatpush3.bf16.msra.mxu0 %v557_v13  ;;  %518 = vmatpush3.bf16.msra.mxu1 %v565_v19 }
  0x55   :  { %523 = vmatprep.subr.bf16.mxu0 %v649_v0 }
  0x57   :  { %500 = vmatmul.mubr.bf16.vlgmr.msra.gmra.mrb[0].mxu0 %v70_v17 }
  0x58   :  { %539 = vmatprep.mubr.msk.bf16.mxu0 %vm650_vm0, %v649_v0  ;;  %524 = vmatpush3.bf16.msra.mxu0 %v566_v20 }
  0x59   :  { %525 = vmatprep.subr.bf16.mxu0 %v649_v0 }
  0x5c   :  { %526 = vmatpush3.bf16.msra.mxu0 %v567_v21 }
  0x5d   :  { %527 = vmatprep.subr.bf16.mxu0 %v649_v0 }
  0x60   :  { %528 = vmatpush3.bf16.msra.mxu0 %v568_v22 }
  0x61   :  { %529 = vmatprep.subr.bf16.mxu0 %v649_v0 }
  0x64   :  { %530 = vmatpush3.bf16.msra.mxu0 %v569_v23 }
  0x65   :  { %531 = vmatprep.subr.bf16.mxu0 %v649_v0 }
  0x68   :  { %532 = vmatpush3.bf16.msra.mxu0 %v570_v24 }
  0x69   :  { %533 = vmatprep.subr.bf16.mxu0 %v649_v0 }
  0x6c   :  { %534 = vmatpush3.bf16.msra.mxu0 %v571_v25 }
  0x6d   :  { %535 = vmatprep.subr.bf16.mxu0 %v649_v0 }
  0x70   :  { %536 = vmatpush3.bf16.msra.mxu0 %v572_v38 }
  0x71   :  { %537 = vmatprep.subr.bf16.mxu0 %v649_v0 }
  0x74   :  { %538 = vmatpush3.bf16.msra.mxu0 %v573_v39 }
 0x12a   :  { %v176_v27 = vpop.f32.mrb[0].mxu0 }
 0x12b   :  { %v177_v28 = vadd.f32 %v429_v26, %v176_v27  ;;  %v501_v29 = vpop.f32.mrb[1].mxu0 }
 0x12c   :  { %v179_v30 = vpop.f32.mrb[2].mxu0 }
 0x12d   :  { %v185_v31 = vmul.f32 0.01, %v177_v28  ;;  %v180_v32 = vadd.f32 %v429_v26, %v179_v30  ;;  %v502_v33 = vpop.f32.mrb[3].mxu0  ;;  %vm183_vm1 = vcmp.ge.f32.partialorder %v177_v28, 0.0 }
 0x12f   :  { %vm184_vm2 = vcmp.ge.f32.partialorder %v180_v32, 0.0  ;;  %v186_v34 = vmul.f32 0.01, %v180_v32  ;;  %v187_v35 = vsel %vm183_vm1, %v177_v28, %v185_v31 }
 0x131   :  { %v188_v36 = vsel %vm184_vm2, %v180_v32, %v186_v34 }
 0x132   :  { %v189_v37 = vpack.c.bf16 %v188_v36, %v187_v35 }
 0x134   :  { %520 = vmatmul.mubr.bf16.vlgmr.msra.gmra.mrb[0].mxu1 %v189_v37 }
 0x207   :  { %v295_v41 = vpop.f32.mrb[0].mxu1 }
 0x208   :  { %v296_v42 = vadd.f32 %v438_v40, %v295_v41  ;;  %v521_v43 = vpop.f32.mrb[1].mxu1 }
 0x209   :  { %v298_v44 = vpop.f32.mrb[2].mxu1 }
 0x20a   :  { %v304_v45 = vmul.f32 0.01, %v296_v42  ;;  %v299_v46 = vadd.f32 %v438_v40, %v298_v44  ;;  %v522_v47 = vpop.f32.mrb[3].mxu1  ;;  %vm302_vm3 = vcmp.ge.f32.partialorder %v296_v42, 0.0 }
 0x20c   :  { %vm303_vm4 = vcmp.ge.f32.partialorder %v299_v46, 0.0  ;;  %v305_v48 = vmul.f32 0.01, %v299_v46  ;;  %v306_v49 = vsel %vm302_vm3, %v296_v42, %v304_v45 }
 0x20e   :  { %v307_v50 = vsel %vm303_vm4, %v299_v46, %v305_v48 }
 0x20f   :  { %v308_v51 = vpack.c.bf16 %v307_v50, %v306_v49 }
 0x211   :  { %540 = vmatmul.mubr.bf16.vlgmr.msra.gmra.mrb[4].mxu0 %v308_v51 }
 0x2e4   :  { %v414_v53 = vpop.f32.mrb[4].mxu0 }
 0x2e5   :  { %v415_v54 = vadd.f32 %v447_v52, %v414_v53  ;;  %v541_v55 = vpop.f32.mrb[5].mxu0 }
 0x2e6   :  { %v417_v56 = vpop.f32.mrb[6].mxu0 }
 0x2e7   :  { %421 = vst [vmem:[%s801_s7] sm:$0xff] %v415_v54  ;;  %v418_v57 = vadd.f32 %v447_v52, %v417_v56  ;;  %v542_v58 = vpop.f32.mrb[7].mxu0 }
 0x2e9   :  { %422 = vst [vmem:[%s801_s7 + $0x8] sm:$0xff] %v418_v57 }
 0x2ea   :  { %427 = vsyncpa [#allocation3], 1 }
 0x2eb   :  { %428 = vsyncpa [#allocation5], 1 }

</bundles_post_ra>
